<compile_context>
chip_gen: v7x
topology: tpu7x:2x2x1
jax: 0.10.0
libtpu: 0.0.40
codegen_flags: <defaults>
</compile_context>

<pallas_src>
import math

import jax
import jax.numpy as jnp
from jax import lax
from jax.experimental import pallas as pl
from jax.experimental.pallas import tpu as pltpu


OUT_PAD = 128  # lane-dense padded width for the fused (classes | sentiments) head


def _round_up(x, m):
    return (x + m - 1) // m * m


def _masked_layer_norm(h, gamma, beta, n_valid, col_valid):
    """LayerNorm over the first n_valid lanes of h (padded lanes are zero)."""
    mu = jnp.sum(h, axis=-1, keepdims=True) * (1.0 / n_valid)
    d = h - mu
    if col_valid is not None:
        d = d * col_valid            # zero out padded lanes before variance
    var = jnp.sum(d * d, axis=-1, keepdims=True) * (1.0 / n_valid)
    return d * lax.rsqrt(var + 1e-5) * gamma + beta


# ----------------------------------------------------------------------------
# Fused kernel: encoder layer + CLS extraction + both heads, for a block of
# TB batch elements per grid step (batch axis "parallel").
# ----------------------------------------------------------------------------
def _make_kernel(H, Hp, S, TB):
    scale = 1.0 / math.sqrt(H)
    TBS = TB * S

    def kernel(x_ref, mask_ref,
               wqkv_ref, bqkv_ref, wo_ref, bo_ref,
               g1_ref, be1_ref, w1_ref, b1_ref, w2_ref, b2_ref,
               g2_ref, be2_ref, wh_ref, bh_ref,
               out_ref):
        col_valid = None
        if Hp != H:
            col_valid = (lax.broadcasted_iota(jnp.int32, (1, Hp), 1) < H
                         ).astype(jnp.float32)

        xb = x_ref[...]                               # (TB, S, Hp) bf16
        x2 = xb.reshape(TBS, Hp)                      # bf16, MXU operand
        xf = x2.astype(jnp.float32)                   # f32 residual stream

        # --- fused QKV projection: one wide bf16 MXU pass, lane-aligned split
        qkv = jnp.dot(x2, wqkv_ref[...],
                      preferred_element_type=jnp.float32) + bqkv_ref[...]
        qkv = qkv.reshape(TB, S, 3 * Hp)
        q = qkv[:, :, :Hp].astype(jnp.bfloat16)
        k = qkv[:, :, Hp:2 * Hp].astype(jnp.bfloat16)
        v = qkv[:, :, 2 * Hp:].astype(jnp.bfloat16)

        # --- batched single-head scaled attention (no explicit transpose) ---
        scores = jnp.einsum('bqd,bkd->bqk', q, k,
                            preferred_element_type=jnp.float32) * scale
        mask = mask_ref[...]                          # (TB, S) f32, 1.0 = keep
        scores = scores + (1.0 - mask)[:, None, :] * (-1e9)

        m = jnp.max(scores, axis=-1, keepdims=True)
        p = jnp.exp(scores - m)
        p = p * pl.reciprocal(jnp.sum(p, axis=-1, keepdims=True), approx=True)

        attn = jnp.einsum('bqk,bkd->bqd', p.astype(jnp.bfloat16), v,
                          preferred_element_type=jnp.float32)
        attn = attn.reshape(TBS, Hp)
        attn = jnp.dot(attn.astype(jnp.bfloat16), wo_ref[...],
                       preferred_element_type=jnp.float32) + bo_ref[...]

        # --- residual + layernorm 1 (f32 VPU path) ---------------------------
        h = xf + attn
        h = _masked_layer_norm(h, g1_ref[...], be1_ref[...], H, col_valid)

        # --- feed-forward, GELU (tanh approx) in f32 -------------------------
        # TODO(synk): torch.nn.GELU default is exact erf; tanh approximation kept.
        f = jnp.dot(h.astype(jnp.bfloat16), w1_ref[...],
                    preferred_element_type=jnp.float32) + b1_ref[...]
        f = 0.5 * f * (1.0 + jnp.tanh(0.7978845608028654 *
                                      (f + 0.044715 * f * f * f)))
        f = jnp.dot(f.astype(jnp.bfloat16), w2_ref[...],
                    preferred_element_type=jnp.float32) + b2_ref[...]

        # --- residual + layernorm 2 ------------------------------------------
        y = h + f
        y = _masked_layer_norm(y, g2_ref[...], be2_ref[...], H, col_valid)

        # --- CLS rows -> fused (classification | sentiment) heads ------------
        cls = y.reshape(TB, S, Hp)[:, 0, :]           # (TB, Hp)
        out = jnp.dot(cls.astype(jnp.bfloat16), wh_ref[...],
                      preferred_element_type=jnp.float32) + bh_ref[...]
        out_ref[...] = out.astype(out_ref.dtype)      # (TB, 128) unmasked store

    return kernel


# ----------------------------------------------------------------------------
# One-time parameter preprocessing: fuse QKV, pad all dims to multiples of
# 128, cast matmul weights to bf16.  Hoisted out of the forward pass.
# ----------------------------------------------------------------------------
def preprocess_params(params):
    H = params["tok_emb"].shape[1]
    F = params["w1"].shape[1]
    C = params["wc"].shape[1]
    Sm = params["ws"].shape[1]
    Hp = _round_up(H, 128)
    Fp = _round_up(F, 128)

    def padw(w, rows, cols):
        out = jnp.zeros((rows, cols), jnp.float32)
        return out.at[:w.shape[0], :w.shape[1]].set(w)

    # Fused QKV weight, Q/K/V column blocks aligned to 128-lane boundaries.
    wqkv = jnp.zeros((Hp, 3 * Hp), jnp.float32)
    wqkv = wqkv.at[:H, 0:H].set(params["wq"])
    wqkv = wqkv.at[:H, Hp:Hp + H].set(params["wk"])
    wqkv = wqkv.at[:H, 2 * Hp:2 * Hp + H].set(params["wv"])
    bqkv = jnp.zeros((1, 3 * Hp), jnp.float32)
    bqkv = bqkv.at[:, 0:H].set(params["bq"])
    bqkv = bqkv.at[:, Hp:Hp + H].set(params["bk"])
    bqkv = bqkv.at[:, 2 * Hp:2 * Hp + H].set(params["bv"])

    wo = padw(params["wo"], Hp, Hp)
    bo = padw(params["bo"], 1, Hp)
    g1 = padw(params["ln1_g"], 1, Hp)   # zero-padded gamma keeps padded lanes 0
    be1 = padw(params["ln1_b"], 1, Hp)
    w1 = padw(params["w1"], Hp, Fp)
    b1 = padw(params["bb1"], 1, Fp)
    w2 = padw(params["w2"], Fp, Hp)
    b2 = padw(params["bb2"], 1, Hp)
    g2 = padw(params["ln2_g"], 1, Hp)
    be2 = padw(params["ln2_b"], 1, Hp)

    # Fused, lane-dense (padded to 128) head weight: [wc | ws | zeros].
    wh = jnp.zeros((Hp, OUT_PAD), jnp.float32)
    wh = wh.at[:H, :C].set(params["wc"]).at[:H, C:C + Sm].set(params["ws"])
    bh = jnp.zeros((1, OUT_PAD), jnp.float32)
    bh = bh.at[:, :C].set(params["bc"]).at[:, C:C + Sm].set(params["bs"])

    weights = [
        wqkv.astype(jnp.bfloat16), bqkv,
        wo.astype(jnp.bfloat16), bo,
        g1, be1,
        w1.astype(jnp.bfloat16), b1,
        w2.astype(jnp.bfloat16), b2,
        g2, be2,
        wh.astype(jnp.bfloat16), bh,
    ]
    return {
        "tok_emb": padw(params["tok_emb"], params["tok_emb"].shape[0], Hp),
        "pos_emb": padw(params["pos_emb"], params["pos_emb"].shape[0], Hp),
        "weights": weights,
        "meta": dict(H=H, Hp=Hp, F=F, Fp=Fp, C=C, Sm=Sm),
    }


# ----------------------------------------------------------------------------
# Full Multi.forward
# ----------------------------------------------------------------------------
def multi_forward(inp_ids, mask, prepped):
    meta = prepped["meta"]
    H, Hp, C, Sm = meta["H"], meta["Hp"], meta["C"], meta["Sm"]
    B, S = inp_ids.shape

    # Glue: token + positional embedding lookup (gather stays in plain JAX).
    # Streamed activations are bf16; f32 math happens inside the kernel.
    x = (prepped["tok_emb"][inp_ids] + prepped["pos_emb"][None, :S, :]
         ).astype(jnp.bfloat16)                     # (B, S, Hp)
    mask_f32 = mask.astype(jnp.float32)             # (B, S)

    # Batch block size: fill the MXU (TB*S rows per matmul); with larger B
    # this yields >= 2 grid blocks so v7x megacore can shard the batch axis.
    TB = min(B, 8)
    while B % TB != 0:
        TB -= 1

    kernel = _make_kernel(H, Hp, S, TB)
    weights = prepped["weights"]

    def resident(w):  # full array, constant index map -> stays in VMEM
        return pl.BlockSpec(w.shape, lambda b: (0, 0))

    in_specs = [
        pl.BlockSpec((TB, S, Hp), lambda b: (b, 0, 0)),   # activation block
        pl.BlockSpec((TB, S), lambda b: (b, 0)),          # matching mask block
    ] + [resident(w) for w in weights]

    out = pl.pallas_call(
        kernel,
        out_shape=jax.ShapeDtypeStruct((B, OUT_PAD), jnp.float32),
        grid=(B // TB,),
        in_specs=in_specs,
        out_specs=pl.BlockSpec((TB, OUT_PAD), lambda b: (b, 0)),
        compiler_params=pltpu.CompilerParams(
            dimension_semantics=("parallel",),
            vmem_limit_bytes=32 * 1024 * 1024),
    )(x, mask_f32, *weights)

    classification_output = out[:, :C]
    sentiment_output = out[:, C:C + Sm]
    return classification_output, sentiment_output


# ----------------------------------------------------------------------------
# Deterministic parameter construction + example run
# ----------------------------------------------------------------------------
def make_params(key, vocab, max_seq, hidden, ffn, classes, sentiments):
    ks = jax.random.split(key, 12)
    std = 0.02
    return {
        "tok_emb": std * jax.random.normal(ks[0], (vocab, hidden), jnp.float32),
        "pos_emb": std * jax.random.normal(ks[1], (max_seq, hidden), jnp.float32),
        "wq": std * jax.random.normal(ks[2], (hidden, hidden), jnp.float32),
        "wk": std * jax.random.normal(ks[3], (hidden, hidden), jnp.float32),
        "wv": std * jax.random.normal(ks[4], (hidden, hidden), jnp.float32),
        "wo": std * jax.random.normal(ks[5], (hidden, hidden), jnp.float32),
        "w1": std * jax.random.normal(ks[6], (hidden, ffn), jnp.float32),
        "w2": std * jax.random.normal(ks[7], (ffn, hidden), jnp.float32),
        "wc": std * jax.random.normal(ks[8], (hidden, classes), jnp.float32),
        "ws": std * jax.random.normal(ks[9], (hidden, sentiments), jnp.float32),
        "bq": jnp.zeros((1, hidden), jnp.float32),
        "bk": jnp.zeros((1, hidden), jnp.float32),
        "bv": jnp.zeros((1, hidden), jnp.float32),
        "bo": jnp.zeros((1, hidden), jnp.float32),
        "bb1": jnp.zeros((1, ffn), jnp.float32),
        "bb2": jnp.zeros((1, hidden), jnp.float32),
        "ln1_g": jnp.ones((1, hidden), jnp.float32),
        "ln1_b": jnp.zeros((1, hidden), jnp.float32),
        "ln2_g": jnp.ones((1, hidden), jnp.float32),
        "ln2_b": jnp.zeros((1, hidden), jnp.float32),
        "bc": 0.01 * jax.random.normal(ks[10], (1, classes), jnp.float32),
        "bs": 0.01 * jax.random.normal(ks[11], (1, sentiments), jnp.float32),
    }


if __name__ == "__main__":
    B, S, H, F = 2, 8, 32, 64
    VOCAB, CLASSES, SENTIMENTS = 50, 5, 3

    key = jax.random.PRNGKey(0)
    k_ids, k_params = jax.random.split(key)

    params = make_params(k_params, VOCAB, S, H, F, CLASSES, SENTIMENTS)
    prepped = preprocess_params(params)   # one-time fusion / padding / bf16 cast

    inp_ids = jax.random.randint(k_ids, (B, S), 0, VOCAB, dtype=jnp.int32)
    # Attention mask: second sequence has 2 padding positions.
    mask = jnp.array([[1, 1, 1, 1, 1, 1, 1, 1],
                      [1, 1, 1, 1, 1, 1, 0, 0]], dtype=jnp.int32)

    cls_out, sent_out = multi_forward(inp_ids, mask, prepped)
    jax.block_until_ready((cls_out, sent_out))

    assert cls_out.shape == (B, CLASSES)
    assert sent_out.shape == (B, SENTIMENTS)
    assert bool(jnp.all(jnp.isfinite(cls_out))) and bool(jnp.all(jnp.isfinite(sent_out)))
    print("KERNEL_OK")
</pallas_src>

<mosaic_0001>
module attributes {stable_mosaic.version = 11 : i64} {
  func.func @kernel(%arg0: i32, %arg1: memref<2x8x128xbf16, #tpu.memory_space<vmem>>, %arg2: memref<2x8xf32, #tpu.memory_space<vmem>>, %arg3: memref<128x384xbf16, #tpu.memory_space<vmem>>, %arg4: memref<1x384xf32, #tpu.memory_space<vmem>>, %arg5: memref<128x128xbf16, #tpu.memory_space<vmem>>, %arg6: memref<1x128xf32, #tpu.memory_space<vmem>>, %arg7: memref<1x128xf32, #tpu.memory_space<vmem>>, %arg8: memref<1x128xf32, #tpu.memory_space<vmem>>, %arg9: memref<128x128xbf16, #tpu.memory_space<vmem>>, %arg10: memref<1x128xf32, #tpu.memory_space<vmem>>, %arg11: memref<128x128xbf16, #tpu.memory_space<vmem>>, %arg12: memref<1x128xf32, #tpu.memory_space<vmem>>, %arg13: memref<1x128xf32, #tpu.memory_space<vmem>>, %arg14: memref<1x128xf32, #tpu.memory_space<vmem>>, %arg15: memref<128x128xbf16, #tpu.memory_space<vmem>>, %arg16: memref<1x128xf32, #tpu.memory_space<vmem>>, %arg17: memref<2x128xf32, #tpu.memory_space<vmem>>) attributes {dimension_semantics = [#tpu.dimension_semantics<parallel>], iteration_bounds = array<i64: 1>, scalar_prefetch = 0 : i64, scratch_operands = 0 : i64, tpu.core_type = #tpu.core_type<tc>, window_params = [{transform_indices = @transform_0, window_bounds = array<i64: 2, 8, 128>}, {transform_indices = @transform_1, window_bounds = array<i64: 2, 8>}, {pipeline_mode = #tpu.pipeline_mode<synchronous>, transform_indices = @transform_2, window_bounds = array<i64: 128, 384>}, {pipeline_mode = #tpu.pipeline_mode<synchronous>, transform_indices = @transform_3, window_bounds = array<i64: 1, 384>}, {pipeline_mode = #tpu.pipeline_mode<synchronous>, transform_indices = @transform_4, window_bounds = array<i64: 128, 128>}, {pipeline_mode = #tpu.pipeline_mode<synchronous>, transform_indices = @transform_5, window_bounds = array<i64: 1, 128>}, {pipeline_mode = #tpu.pipeline_mode<synchronous>, transform_indices = @transform_6, window_bounds = array<i64: 1, 128>}, {pipeline_mode = #tpu.pipeline_mode<synchronous>, transform_indices = @transform_7, window_bounds = array<i64: 1, 128>}, {pipeline_mode = #tpu.pipeline_mode<synchronous>, transform_indices = @transform_8, window_bounds = array<i64: 128, 128>}, {pipeline_mode = #tpu.pipeline_mode<synchronous>, transform_indices = @transform_9, window_bounds = array<i64: 1, 128>}, {pipeline_mode = #tpu.pipeline_mode<synchronous>, transform_indices = @transform_10, window_bounds = array<i64: 128, 128>}, {pipeline_mode = #tpu.pipeline_mode<synchronous>, transform_indices = @transform_11, window_bounds = array<i64: 1, 128>}, {pipeline_mode = #tpu.pipeline_mode<synchronous>, transform_indices = @transform_12, window_bounds = array<i64: 1, 128>}, {pipeline_mode = #tpu.pipeline_mode<synchronous>, transform_indices = @transform_13, window_bounds = array<i64: 1, 128>}, {pipeline_mode = #tpu.pipeline_mode<synchronous>, transform_indices = @transform_14, window_bounds = array<i64: 128, 128>}, {pipeline_mode = #tpu.pipeline_mode<synchronous>, transform_indices = @transform_15, window_bounds = array<i64: 1, 128>}, {transform_indices = @transform_16, window_bounds = array<i64: 2, 128>}]} {
    %0 = tpu.iota {dimensions = array<i32: 1>} : vector<1x128xi32>
    %c32_i32 = arith.constant 32 : i32
    %1 = vector.broadcast %c32_i32 : i32 to vector<1x128xi32>
    %2 = arith.cmpi slt, %0, %1 : vector<1x128xi32>
    %3 = arith.extui %2 : vector<1x128xi1> to vector<1x128xi32>
    %4 = arith.sitofp %3 : vector<1x128xi32> to vector<1x128xf32>
    %c0 = arith.constant 0 : index
    %c0_0 = arith.constant 0 : index
    %c0_1 = arith.constant 0 : index
    %5 = vector.load %arg1[%c0, %c0_0, %c0_1] : memref<2x8x128xbf16, #tpu.memory_space<vmem>>, vector<2x8x128xbf16>
    %6 = vector.shape_cast %5 : vector<2x8x128xbf16> to vector<16x128xbf16>
    %7 = arith.extf %6 : vector<16x128xbf16> to vector<16x128xf32>
    %c0_2 = arith.constant 0 : index
    %c0_3 = arith.constant 0 : index
    %8 = vector.load %arg3[%c0_2, %c0_3] : memref<128x384xbf16, #tpu.memory_space<vmem>>, vector<128x384xbf16>
    %cst = arith.constant dense<0.000000e+00> : vector<16x384xf32>
    %9 = tpu.matmul %6, %8, %cst {dimension_numbers = #tpu.dot_dimension_numbers<[1], [0], [0], [1], [0, 0, 1, 1], [], []>} : vector<16x128xbf16>, vector<128x384xbf16>, vector<16x384xf32> -> vector<16x384xf32>
    %c0_4 = arith.constant 0 : index
    %c0_5 = arith.constant 0 : index
    %10 = vector.load %arg4[%c0_4, %c0_5] : memref<1x384xf32, #tpu.memory_space<vmem>>, vector<1x384xf32>
    %11 = vector.broadcast %10 : vector<1x384xf32> to vector<16x384xf32>
    %12 = arith.addf %9, %11 : vector<16x384xf32>
    %13 = vector.shape_cast %12 : vector<16x384xf32> to vector<2x8x384xf32>
    %14 = vector.extract_strided_slice %13 {offsets = [0, 0, 0], sizes = [2, 8, 128], strides = [1, 1, 1]} : vector<2x8x384xf32> to vector<2x8x128xf32>
    %15 = arith.truncf %14 : vector<2x8x128xf32> to vector<2x8x128xbf16>
    %16 = vector.extract_strided_slice %13 {offsets = [0, 0, 128], sizes = [2, 8, 128], strides = [1, 1, 1]} : vector<2x8x384xf32> to vector<2x8x128xf32>
    %17 = arith.truncf %16 : vector<2x8x128xf32> to vector<2x8x128xbf16>
    %18 = vector.extract_strided_slice %13 {offsets = [0, 0, 256], sizes = [2, 8, 128], strides = [1, 1, 1]} : vector<2x8x384xf32> to vector<2x8x128xf32>
    %19 = arith.truncf %18 : vector<2x8x128xf32> to vector<2x8x128xbf16>
    "tpu.trace_start"() <{level = 10 : i32, message = "bqd,bkd->bqk"}> : () -> ()
    %cst_6 = arith.constant dense<0.000000e+00> : vector<2x8x8xf32>
    %20 = tpu.matmul %15, %17, %cst_6 {dimension_numbers = #tpu.dot_dimension_numbers<[2], [2], [1], [1], [0, 0, 0, 1, 1, 1], [0], [0]>} : vector<2x8x128xbf16>, vector<2x8x128xbf16>, vector<2x8x8xf32> -> vector<2x8x8xf32>
    "tpu.trace_stop"() : () -> ()
    %cst_7 = arith.constant 0.176776692 : f32
    %21 = vector.broadcast %cst_7 : f32 to vector<2x8x8xf32>
    %22 = arith.mulf %20, %21 : vector<2x8x8xf32>
    %c0_8 = arith.constant 0 : index
    %c0_9 = arith.constant 0 : index
    %23 = vector.load %arg2[%c0_8, %c0_9] : memref<2x8xf32, #tpu.memory_space<vmem>>, vector<2x8xf32>
    %cst_10 = arith.constant 1.000000e+00 : f32
    %24 = vector.broadcast %cst_10 : f32 to vector<2x8xf32>
    %25 = arith.subf %24, %23 : vector<2x8xf32>
    %26 = vector.shape_cast %25 : vector<2x8xf32> to vector<2x1x8xf32>
    %cst_11 = arith.constant -1.000000e+09 : f32
    %27 = vector.broadcast %cst_11 : f32 to vector<2x1x8xf32>
    %28 = arith.mulf %26, %27 : vector<2x1x8xf32>
    %29 = vector.broadcast %28 : vector<2x1x8xf32> to vector<2x8x8xf32>
    %30 = arith.addf %22, %29 : vector<2x8x8xf32>
    %cst_12 = arith.constant dense<0xFF800000> : vector<2x8xf32>
    %31 = vector.multi_reduction <maximumf>, %30, %cst_12 [2] : vector<2x8x8xf32> to vector<2x8xf32>
    %32 = vector.shape_cast %31 : vector<2x8xf32> to vector<2x8x1xf32>
    %33 = vector.broadcast %32 : vector<2x8x1xf32> to vector<2x8x8xf32>
    %34 = arith.subf %30, %33 : vector<2x8x8xf32>
    %35 = math.exp %34 : vector<2x8x8xf32>
    %cst_13 = arith.constant dense<0.000000e+00> : vector<2x8xf32>
    %36 = vector.multi_reduction <add>, %35, %cst_13 [2] : vector<2x8x8xf32> to vector<2x8xf32>
    %37 = vector.shape_cast %36 : vector<2x8xf32> to vector<2x8x1xf32>
    %38 = tpu.reciprocal %37 {approx = true} : vector<2x8x1xf32> -> vector<2x8x1xf32>
    %39 = vector.broadcast %38 : vector<2x8x1xf32> to vector<2x8x8xf32>
    %40 = arith.mulf %35, %39 : vector<2x8x8xf32>
    %41 = arith.truncf %40 : vector<2x8x8xf32> to vector<2x8x8xbf16>
    "tpu.trace_start"() <{level = 10 : i32, message = "bqk,bkd->bqd"}> : () -> ()
    %cst_14 = arith.constant dense<0.000000e+00> : vector<2x8x128xf32>
    %42 = tpu.matmul %41, %19, %cst_14 {dimension_numbers = #tpu.dot_dimension_numbers<[2], [1], [1], [2], [0, 0, 0, 1, 1, 2], [0], [0]>} : vector<2x8x8xbf16>, vector<2x8x128xbf16>, vector<2x8x128xf32> -> vector<2x8x128xf32>
    "tpu.trace_stop"() : () -> ()
    %43 = vector.shape_cast %42 : vector<2x8x128xf32> to vector<16x128xf32>
    %44 = arith.truncf %43 : vector<16x128xf32> to vector<16x128xbf16>
    %c0_15 = arith.constant 0 : index
    %c0_16 = arith.constant 0 : index
    %45 = vector.load %arg5[%c0_15, %c0_16] : memref<128x128xbf16, #tpu.memory_space<vmem>>, vector<128x128xbf16>
    %cst_17 = arith.constant dense<0.000000e+00> : vector<16x128xf32>
    %46 = tpu.matmul %44, %45, %cst_17 {dimension_numbers = #tpu.dot_dimension_numbers<[1], [0], [0], [1], [0, 0, 1, 1], [], []>} : vector<16x128xbf16>, vector<128x128xbf16>, vector<16x128xf32> -> vector<16x128xf32>
    %c0_18 = arith.constant 0 : index
    %c0_19 = arith.constant 0 : index
    %47 = vector.load %arg6[%c0_18, %c0_19] : memref<1x128xf32, #tpu.memory_space<vmem>>, vector<1x128xf32>
    %48 = vector.broadcast %47 : vector<1x128xf32> to vector<16x128xf32>
    %49 = arith.addf %46, %48 : vector<16x128xf32>
    %50 = arith.addf %7, %49 : vector<16x128xf32>
    %c0_20 = arith.constant 0 : index
    %c0_21 = arith.constant 0 : index
    %51 = vector.load %arg7[%c0_20, %c0_21] : memref<1x128xf32, #tpu.memory_space<vmem>>, vector<1x128xf32>
    %c0_22 = arith.constant 0 : index
    %c0_23 = arith.constant 0 : index
    %52 = vector.load %arg8[%c0_22, %c0_23] : memref<1x128xf32, #tpu.memory_space<vmem>>, vector<1x128xf32>
    %cst_24 = arith.constant dense<0.000000e+00> : vector<16xf32>
    %53 = vector.multi_reduction <add>, %50, %cst_24 [1] : vector<16x128xf32> to vector<16xf32>
    %54 = vector.shape_cast %53 : vector<16xf32> to vector<16x1xf32>
    %cst_25 = arith.constant 3.125000e-02 : f32
    %55 = vector.broadcast %cst_25 : f32 to vector<16x1xf32>
    %56 = arith.mulf %54, %55 : vector<16x1xf32>
    %57 = vector.broadcast %56 : vector<16x1xf32> to vector<16x128xf32>
    %58 = arith.subf %50, %57 : vector<16x128xf32>
    %59 = vector.broadcast %4 : vector<1x128xf32> to vector<16x128xf32>
    %60 = arith.mulf %58, %59 : vector<16x128xf32>
    %61 = arith.mulf %60, %60 : vector<16x128xf32>
    %cst_26 = arith.constant dense<0.000000e+00> : vector<16xf32>
    %62 = vector.multi_reduction <add>, %61, %cst_26 [1] : vector<16x128xf32> to vector<16xf32>
    %63 = vector.shape_cast %62 : vector<16xf32> to vector<16x1xf32>
    %cst_27 = arith.constant 3.125000e-02 : f32
    %64 = vector.broadcast %cst_27 : f32 to vector<16x1xf32>
    %65 = arith.mulf %63, %64 : vector<16x1xf32>
    %cst_28 = arith.constant 9.99999974E-6 : f32
    %66 = vector.broadcast %cst_28 : f32 to vector<16x1xf32>
    %67 = arith.addf %65, %66 : vector<16x1xf32>
    %68 = math.rsqrt %67 : vector<16x1xf32>
    %69 = vector.broadcast %68 : vector<16x1xf32> to vector<16x128xf32>
    %70 = arith.mulf %60, %69 : vector<16x128xf32>
    %71 = vector.broadcast %51 : vector<1x128xf32> to vector<16x128xf32>
    %72 = arith.mulf %70, %71 : vector<16x128xf32>
    %73 = vector.broadcast %52 : vector<1x128xf32> to vector<16x128xf32>
    %74 = arith.addf %72, %73 : vector<16x128xf32>
    %75 = arith.truncf %74 : vector<16x128xf32> to vector<16x128xbf16>
    %c0_29 = arith.constant 0 : index
    %c0_30 = arith.constant 0 : index
    %76 = vector.load %arg9[%c0_29, %c0_30] : memref<128x128xbf16, #tpu.memory_space<vmem>>, vector<128x128xbf16>
    %cst_31 = arith.constant dense<0.000000e+00> : vector<16x128xf32>
    %77 = tpu.matmul %75, %76, %cst_31 {dimension_numbers = #tpu.dot_dimension_numbers<[1], [0], [0], [1], [0, 0, 1, 1], [], []>} : vector<16x128xbf16>, vector<128x128xbf16>, vector<16x128xf32> -> vector<16x128xf32>
    %c0_32 = arith.constant 0 : index
    %c0_33 = arith.constant 0 : index
    %78 = vector.load %arg10[%c0_32, %c0_33] : memref<1x128xf32, #tpu.memory_space<vmem>>, vector<1x128xf32>
    %79 = vector.broadcast %78 : vector<1x128xf32> to vector<16x128xf32>
    %80 = arith.addf %77, %79 : vector<16x128xf32>
    %cst_34 = arith.constant 5.000000e-01 : f32
    %81 = vector.broadcast %cst_34 : f32 to vector<16x128xf32>
    %82 = arith.mulf %81, %80 : vector<16x128xf32>
    %cst_35 = arith.constant 4.471500e-02 : f32
    %83 = vector.broadcast %cst_35 : f32 to vector<16x128xf32>
    %84 = arith.mulf %83, %80 : vector<16x128xf32>
    %85 = arith.mulf %84, %80 : vector<16x128xf32>
    %86 = arith.mulf %85, %80 : vector<16x128xf32>
    %87 = arith.addf %80, %86 : vector<16x128xf32>
    %cst_36 = arith.constant 0.797884583 : f32
    %88 = vector.broadcast %cst_36 : f32 to vector<16x128xf32>
    %89 = arith.mulf %88, %87 : vector<16x128xf32>
    %90 = math.tanh %89 : vector<16x128xf32>
    %cst_37 = arith.constant 1.000000e+00 : f32
    %91 = vector.broadcast %cst_37 : f32 to vector<16x128xf32>
    %92 = arith.addf %91, %90 : vector<16x128xf32>
    %93 = arith.mulf %82, %92 : vector<16x128xf32>
    %94 = arith.truncf %93 : vector<16x128xf32> to vector<16x128xbf16>
    %c0_38 = arith.constant 0 : index
    %c0_39 = arith.constant 0 : index
    %95 = vector.load %arg11[%c0_38, %c0_39] : memref<128x128xbf16, #tpu.memory_space<vmem>>, vector<128x128xbf16>
    %cst_40 = arith.constant dense<0.000000e+00> : vector<16x128xf32>
    %96 = tpu.matmul %94, %95, %cst_40 {dimension_numbers = #tpu.dot_dimension_numbers<[1], [0], [0], [1], [0, 0, 1, 1], [], []>} : vector<16x128xbf16>, vector<128x128xbf16>, vector<16x128xf32> -> vector<16x128xf32>
    %c0_41 = arith.constant 0 : index
    %c0_42 = arith.constant 0 : index
    %97 = vector.load %arg12[%c0_41, %c0_42] : memref<1x128xf32, #tpu.memory_space<vmem>>, vector<1x128xf32>
    %98 = vector.broadcast %97 : vector<1x128xf32> to vector<16x128xf32>
    %99 = arith.addf %96, %98 : vector<16x128xf32>
    %100 = arith.addf %74, %99 : vector<16x128xf32>
    %c0_43 = arith.constant 0 : index
    %c0_44 = arith.constant 0 : index
    %101 = vector.load %arg13[%c0_43, %c0_44] : memref<1x128xf32, #tpu.memory_space<vmem>>, vector<1x128xf32>
    %c0_45 = arith.constant 0 : index
    %c0_46 = arith.constant 0 : index
    %102 = vector.load %arg14[%c0_45, %c0_46] : memref<1x128xf32, #tpu.memory_space<vmem>>, vector<1x128xf32>
    %cst_47 = arith.constant dense<0.000000e+00> : vector<16xf32>
    %103 = vector.multi_reduction <add>, %100, %cst_47 [1] : vector<16x128xf32> to vector<16xf32>
    %104 = vector.shape_cast %103 : vector<16xf32> to vector<16x1xf32>
    %cst_48 = arith.constant 3.125000e-02 : f32
    %105 = vector.broadcast %cst_48 : f32 to vector<16x1xf32>
    %106 = arith.mulf %104, %105 : vector<16x1xf32>
    %107 = vector.broadcast %106 : vector<16x1xf32> to vector<16x128xf32>
    %108 = arith.subf %100, %107 : vector<16x128xf32>
    %109 = vector.broadcast %4 : vector<1x128xf32> to vector<16x128xf32>
    %110 = arith.mulf %108, %109 : vector<16x128xf32>
    %111 = arith.mulf %110, %110 : vector<16x128xf32>
    %cst_49 = arith.constant dense<0.000000e+00> : vector<16xf32>
    %112 = vector.multi_reduction <add>, %111, %cst_49 [1] : vector<16x128xf32> to vector<16xf32>
    %113 = vector.shape_cast %112 : vector<16xf32> to vector<16x1xf32>
    %cst_50 = arith.constant 3.125000e-02 : f32
    %114 = vector.broadcast %cst_50 : f32 to vector<16x1xf32>
    %115 = arith.mulf %113, %114 : vector<16x1xf32>
    %cst_51 = arith.constant 9.99999974E-6 : f32
    %116 = vector.broadcast %cst_51 : f32 to vector<16x1xf32>
    %117 = arith.addf %115, %116 : vector<16x1xf32>
    %118 = math.rsqrt %117 : vector<16x1xf32>
    %119 = vector.broadcast %118 : vector<16x1xf32> to vector<16x128xf32>
    %120 = arith.mulf %110, %119 : vector<16x128xf32>
    %121 = vector.broadcast %101 : vector<1x128xf32> to vector<16x128xf32>
    %122 = arith.mulf %120, %121 : vector<16x128xf32>
    %123 = vector.broadcast %102 : vector<1x128xf32> to vector<16x128xf32>
    %124 = arith.addf %122, %123 : vector<16x128xf32>
    %125 = vector.shape_cast %124 : vector<16x128xf32> to vector<2x8x128xf32>
    %126 = vector.extract_strided_slice %125 {offsets = [0, 0, 0], sizes = [2, 1, 128], strides = [1, 1, 1]} : vector<2x8x128xf32> to vector<2x1x128xf32>
    %127 = vector.shape_cast %126 : vector<2x1x128xf32> to vector<2x128xf32>
    %128 = arith.truncf %127 : vector<2x128xf32> to vector<2x128xbf16>
    %c0_52 = arith.constant 0 : index
    %c0_53 = arith.constant 0 : index
    %129 = vector.load %arg15[%c0_52, %c0_53] : memref<128x128xbf16, #tpu.memory_space<vmem>>, vector<128x128xbf16>
    %cst_54 = arith.constant dense<0.000000e+00> : vector<2x128xf32>
    %130 = tpu.matmul %128, %129, %cst_54 {dimension_numbers = #tpu.dot_dimension_numbers<[1], [0], [0], [1], [0, 0, 1, 1], [], []>} : vector<2x128xbf16>, vector<128x128xbf16>, vector<2x128xf32> -> vector<2x128xf32>
    %c0_55 = arith.constant 0 : index
    %c0_56 = arith.constant 0 : index
    %131 = vector.load %arg16[%c0_55, %c0_56] : memref<1x128xf32, #tpu.memory_space<vmem>>, vector<1x128xf32>
    %132 = vector.broadcast %131 : vector<1x128xf32> to vector<2x128xf32>
    %133 = arith.addf %130, %132 : vector<2x128xf32>
    %c0_57 = arith.constant 0 : index
    %c0_58 = arith.constant 0 : index
    %134 = vector.load %arg17[%c0_57, %c0_58] : memref<2x128xf32, #tpu.memory_space<vmem>>, vector<2x128xf32>
    tpu.vector_store %arg17[%c0_57, %c0_58], %133 {strides = array<i32>} : memref<2x128xf32, #tpu.memory_space<vmem>>, vector<2x128xf32>,
    return
  }
  func.func @transform_0(%arg0: i32) -> (i32, i32, i32) {
    %c0_i32 = arith.constant 0 : i32
    %c0_i32_0 = arith.constant 0 : i32
    %c0_i32_1 = arith.constant 0 : i32
    return %arg0, %c0_i32, %c0_i32_0 : i32, i32, i32
  }
  func.func @transform_1(%arg0: i32) -> (i32, i32) {
    %c0_i32 = arith.constant 0 : i32
    %c0_i32_0 = arith.constant 0 : i32
    return %arg0, %c0_i32 : i32, i32
  }
  func.func @transform_2(%arg0: i32) -> (i32, i32) {
    %c0_i32 = arith.constant 0 : i32
    %c0_i32_0 = arith.constant 0 : i32
    %c0_i32_1 = arith.constant 0 : i32
    return %c0_i32, %c0_i32_0 : i32, i32
  }
  func.func @transform_3(%arg0: i32) -> (i32, i32) {
    %c0_i32 = arith.constant 0 : i32
    %c0_i32_0 = arith.constant 0 : i32
    %c0_i32_1 = arith.constant 0 : i32
    return %c0_i32, %c0_i32_0 : i32, i32
  }
  func.func @transform_4(%arg0: i32) -> (i32, i32) {
    %c0_i32 = arith.constant 0 : i32
    %c0_i32_0 = arith.constant 0 : i32
    %c0_i32_1 = arith.constant 0 : i32
    return %c0_i32, %c0_i32_0 : i32, i32
  }
  func.func @transform_5(%arg0: i32) -> (i32, i32) {
    %c0_i32 = arith.constant 0 : i32
    %c0_i32_0 = arith.constant 0 : i32
    %c0_i32_1 = arith.constant 0 : i32
    return %c0_i32, %c0_i32_0 : i32, i32
  }
  func.func @transform_6(%arg0: i32) -> (i32, i32) {
    %c0_i32 = arith.constant 0 : i32
    %c0_i32_0 = arith.constant 0 : i32
    %c0_i32_1 = arith.constant 0 : i32
    return %c0_i32, %c0_i32_0 : i32, i32
  }
  func.func @transform_7(%arg0: i32) -> (i32, i32) {
    %c0_i32 = arith.constant 0 : i32
    %c0_i32_0 = arith.constant 0 : i32
    %c0_i32_1 = arith.constant 0 : i32
    return %c0_i32, %c0_i32_0 : i32, i32
  }
  func.func @transform_8(%arg0: i32) -> (i32, i32) {
    %c0_i32 = arith.constant 0 : i32
    %c0_i32_0 = arith.constant 0 : i32
    %c0_i32_1 = arith.constant 0 : i32
    return %c0_i32, %c0_i32_0 : i32, i32
  }
  func.func @transform_9(%arg0: i32) -> (i32, i32) {
    %c0_i32 = arith.constant 0 : i32
    %c0_i32_0 = arith.constant 0 : i32
    %c0_i32_1 = arith.constant 0 : i32
    return %c0_i32, %c0_i32_0 : i32, i32
  }
  func.func @transform_10(%arg0: i32) -> (i32, i32) {
    %c0_i32 = arith.constant 0 : i32
    %c0_i32_0 = arith.constant 0 : i32
    %c0_i32_1 = arith.constant 0 : i32
    return %c0_i32, %c0_i32_0 : i32, i32
  }
  func.func @transform_11(%arg0: i32) -> (i32, i32) {
    %c0_i32 = arith.constant 0 : i32
    %c0_i32_0 = arith.constant 0 : i32
    %c0_i32_1 = arith.constant 0 : i32
    return %c0_i32, %c0_i32_0 : i32, i32
  }
  func.func @transform_12(%arg0: i32) -> (i32, i32) {
    %c0_i32 = arith.constant 0 : i32
    %c0_i32_0 = arith.constant 0 : i32
    %c0_i32_1 = arith.constant 0 : i32
    return %c0_i32, %c0_i32_0 : i32, i32
  }
  func.func @transform_13(%arg0: i32) -> (i32, i32) {
    %c0_i32 = arith.constant 0 : i32
    %c0_i32_0 = arith.constant 0 : i32
    %c0_i32_1 = arith.constant 0 : i32
    return %c0_i32, %c0_i32_0 : i32, i32
  }
  func.func @transform_14(%arg0: i32) -> (i32, i32) {
    %c0_i32 = arith.constant 0 : i32
    %c0_i32_0 = arith.constant 0 : i32
    %c0_i32_1 = arith.constant 0 : i32
    return %c0_i32, %c0_i32_0 : i32, i32
  }
  func.func @transform_15(%arg0: i32) -> (i32, i32) {
    %c0_i32 = arith.constant 0 : i32
    %c0_i32_0 = arith.constant 0 : i32
    %c0_i32_1 = arith.constant 0 : i32
    return %c0_i32, %c0_i32_0 : i32, i32
  }
  func.func @transform_16(%arg0: i32) -> (i32, i32) {
    %c0_i32 = arith.constant 0 : i32
    %c0_i32_0 = arith.constant 0 : i32
    return %arg0, %c0_i32 : i32, i32
  }
}

</mosaic_0001>

<bundles_post_ra>
// kernel: tpu_custom_call.1
= control target key start
LH: loop header
LB: loop body
LE: loop exit
PB: predicated region body
PF: predicated region fallthrough
CT: control target
= control target key end

     0   :  { %s2083_s0 = inlined_call_operand.hbm [shape: bf16[2,8,128], index: 0, kind: input, shape index: {}]   ;;  %s2084_s1 = inlined_call_operand.vmem [shape: f32[2,8], index: 1, kind: input, shape index: {}]   ;;  %s2085_s2 = inlined_call_operand.hbm [shape: bf16[128,384], index: 2, kind: input, shape index: {}]   ;;  %s2086_s3 = inlined_call_operand.vmem [shape: f32[1,384], index: 3, kind: input, shape index: {}]   ;;  %s2087_s4 = inlined_call_operand.hbm [shape: bf16[128,128], index: 4, kind: input, shape index: {}]   ;;  %s2088_s5 = inlined_call_operand.vmem [shape: f32[1,128], index: 5, kind: input, shape index: {}]   ;;  %s2089_s6 = inlined_call_operand.vmem [shape: f32[1,128], index: 6, kind: input, shape index: {}]   ;;  %s2090_s7 = inlined_call_operand.vmem [shape: f32[1,128], index: 7, kind: input, shape index: {}]   ;;  %s2091_s8 = inlined_call_operand.hbm [shape: bf16[128,128], index: 8, kind: input, shape index: {}]   ;;  %s2092_s9 = inlined_call_operand.vmem [shape: f32[1,128], index: 9, kind: input, shape index: {}]   ;;  %s2093_s10 = inlined_call_operand.hbm [shape: bf16[128,128], index: 10, kind: input, shape index: {}]   ;;  %s2094_s11 = inlined_call_operand.vmem [shape: f32[1,128], index: 11, kind: input, shape index: {}]   ;;  %s2095_s12 = inlined_call_operand.vmem [shape: f32[1,128], index: 12, kind: input, shape index: {}]   ;;  %s2096_s13 = inlined_call_operand.vmem [shape: f32[1,128], index: 13, kind: input, shape index: {}]   ;;  %s2097_s14 = inlined_call_operand.hbm [shape: bf16[128,128], index: 14, kind: input, shape index: {}]   ;;  %s2098_s15 = inlined_call_operand.vmem [shape: f32[1,128], index: 15, kind: input, shape index: {}]   ;;  %s2099_s16 = inlined_call_operand.hbm [shape: f32[2,128], index: 16, kind: output, shape index: {}]  }
   0x1   :  { %2102 = sst [smem:[#allocation19_spill]] %s2083_s0 }
   0x2   :  { %2103 = sst [smem:[#allocation20_spill]] %s2099_s16 }
   0x3   :  { %21 = vsyncpa [#allocation3], 0 }
   0x4   :  { %22 = vsyncpa [#allocation6], 0 }
   0x5   :  { %23 = vsyncpa [#allocation9], 0 }
   0x6   :  { %24 = vsyncpa [#allocation12], 0 }
   0x7   :  { %25 = vsyncpa [#allocation4], 0  ;;  %s1758_s21 = smov [#allocation5]   ;;  %s1594_s25 = scalar_lea.hbm %s2085_s2, 3072 }
   0x8   :  { %s45_s22 = sshll.u32 %s1758_s21, 4  ;;  %p1595_p0 = scmp.ne.s32.totalorder %s2085_s2, %s1594_s25  ;;  %s46_s22 = int_to_ptr.vmem [resolvable:$true] %s45_s22 }
   0x9   :  { %p1598_p1 = scmp.lt.u32.totalorder %s1594_s25, %s2085_s2 }
   0xb   :  { %p1600_p2 = pnand %p1598_p1, %p1595_p0 }
   0xd   :  { %1603 = shalt.err (!%p1600_p2)
}
   0xe   :  { %s1604_s30 = scalar_lea.vmem %s46_s22, 3072  ;;  %p1609_p4 = scmp.lt.s32.totalorder %s46_s22, %s46_s22 }
   0xf   :  { %p1605_p3 = scmp.ne.s32.totalorder %s46_s22, %s1604_s30  ;;  %p1610_p5 = scmp.lt.s32.totalorder %s1604_s30, %s1604_s30 }
  0x11   :  { %p1611_p6 = por %p1610_p5, %p1609_p4 }
  0x13   :  { %p1612_p7 = pnand %p1611_p6, %p1605_p3 }
  0x15   :  { %1615 = shalt.err (!%p1612_p7)
}
  0x16   :  { %s1759_s0 = smov 192   ;;  %s1760_s17 = smov 12  }
  0x17   :  { %51 = dma.hbm_to_vmem [thread:$0]  %s2085_s2, 3072, %s46_s22, [#allocation6], %s1759_s0, %s1759_s0, %s1760_s17  }
  0x18   :  { %s1761_s20 = smov [#allocation8]   ;;  %s1762_s23 = smov [#allocation2]  }
  0x19   :  { %s77_s21 = sshll.u32 %s1761_s20, 4  ;;  %s31_s24 = sshll.u32 %s1762_s23, 4  ;;  %s78_s21 = int_to_ptr.vmem [resolvable:$true] %s77_s21  ;;  %s32_s24 = int_to_ptr.vmem [resolvable:$true] %s31_s24 }
  0x1a   :  { %s1616_s27 = scalar_lea.hbm %s2091_s8, 1024 }
  0x1b   :  { %p1617_p8 = scmp.ne.s32.totalorder %s2091_s8, %s1616_s27  ;;  %p1620_p9 = scmp.lt.u32.totalorder %s1616_s27, %s2091_s8 }
  0x1d   :  { %p1622_p10 = pnand %p1620_p9, %p1617_p8 }
  0x1f   :  { %1625 = shalt.err (!%p1622_p10)
}
  0x20   :  { %s1626_s2 = scalar_lea.vmem %s78_s21, 1024  ;;  %p1631_p12 = scmp.lt.s32.totalorder %s78_s21, %s78_s21 }
  0x21   :  { %p1627_p11 = scmp.ne.s32.totalorder %s78_s21, %s1626_s2  ;;  %p1632_p13 = scmp.lt.s32.totalorder %s1626_s2, %s1626_s2 }
  0x23   :  { %p1633_p0 = por %p1632_p13, %p1631_p12 }
  0x25   :  { %p1634_p1 = pnand %p1633_p0, %p1627_p11 }
  0x27   :  { %1637 = shalt.err (!%p1634_p1)
}
  0x28   :  { %s1763_s22 = smov 64   ;;  %s1764_s0 = smov 4  }
  0x29   :  { %83 = dma.hbm_to_vmem [thread:$0]  %s2091_s8, 1024, %s78_s21, [#allocation9], %s1763_s22, %s1763_s22, %s1764_s0  }
  0x2a   :  { %s2104_s20 = sld [smem:[#allocation19_spill]] }
  0x30   :  { %s1638_s23 = scalar_lea.hbm %s2104_s20, 128 }
  0x31   :  { %p1639_p2 = scmp.ne.s32.totalorder %s2104_s20, %s1638_s23  ;;  %p1642_p3 = scmp.lt.u32.totalorder %s1638_s23, %s2104_s20 }
  0x33   :  { %p1644_p4 = pnand %p1642_p3, %p1639_p2 }
  0x35   :  { %1647 = shalt.err (!%p1644_p4)
}
  0x36   :  { %s1648_s29 = scalar_lea.vmem %s32_s24, 128  ;;  %p1653_p6 = scmp.lt.s32.totalorder %s32_s24, %s32_s24 }
  0x37   :  { %p1649_p5 = scmp.ne.s32.totalorder %s32_s24, %s1648_s29  ;;  %p1654_p7 = scmp.lt.s32.totalorder %s1648_s29, %s1648_s29 }
  0x39   :  { %p1655_p8 = por %p1654_p7, %p1653_p6 }
  0x3b   :  { %p1656_p9 = pnand %p1655_p8, %p1649_p5 }
  0x3d   :  { %1659 = shalt.err (!%p1656_p9)
}
  0x3e   :  { %37 = dma.hbm_to_vmem [thread:$0]  %s2104_s20, 128, %s32_s24, [#allocation3], %s1763_s22, %s1763_s22, %s1764_s0  }
  0x3f   :  { %s1765_s30 = smov [#allocation7]   ;;  %s1766_s17 = smov [#allocation10]  }
  0x40   :  { %s59_s2 = sshll.u32 %s1765_s30, 4  ;;  %s91_s18 = sshll.u32 %s1766_s17, 4  ;;  %s60_s2 = int_to_ptr.vmem [resolvable:$true] %s59_s2  ;;  %s92_s18 = int_to_ptr.vmem [resolvable:$true] %s91_s18 }
  0x41   :  { %s1660_s23 = scalar_lea.hbm %s2087_s4, 1024 }
  0x42   :  { %p1661_p10 = scmp.ne.s32.totalorder %s2087_s4, %s1660_s23  ;;  %p1664_p11 = scmp.lt.u32.totalorder %s1660_s23, %s2087_s4 }
  0x44   :  { %p1666_p12 = pnand %p1664_p11, %p1661_p10 }
  0x46   :  { %1669 = shalt.err (!%p1666_p12)
}
  0x47   :  { %s1670_s24 = scalar_lea.vmem %s60_s2, 1024  ;;  %p1675_p0 = scmp.lt.s32.totalorder %s60_s2, %s60_s2 }
  0x48   :  { %p1671_p13 = scmp.ne.s32.totalorder %s60_s2, %s1670_s24  ;;  %p1676_p1 = scmp.lt.s32.totalorder %s1670_s24, %s1670_s24 }
  0x4a   :  { %p1677_p2 = por %p1676_p1, %p1675_p0 }
  0x4c   :  { %p1678_p3 = pnand %p1677_p2, %p1671_p13 }
  0x4e   :  { %1681 = shalt.err (!%p1678_p3)
}
  0x4f   :  { %65 = dma.hbm_to_vmem [thread:$0]  %s2087_s4, 1024, %s60_s2, [#allocation6], %s1763_s22, %s1763_s22, %s1764_s0  }
  0x50   :  { %s1682_s30 = scalar_lea.hbm %s2093_s10, 1024 }
  0x51   :  { %p1683_p4 = scmp.ne.s32.totalorder %s2093_s10, %s1682_s30  ;;  %p1686_p5 = scmp.lt.u32.totalorder %s1682_s30, %s2093_s10 }
  0x53   :  { %p1688_p6 = pnand %p1686_p5, %p1683_p4 }
  0x55   :  { %1691 = shalt.err (!%p1688_p6)
}
  0x56   :  { %s1692_s25 = scalar_lea.vmem %s92_s18, 1024  ;;  %p1697_p8 = scmp.lt.s32.totalorder %s92_s18, %s92_s18 }
  0x57   :  { %p1693_p7 = scmp.ne.s32.totalorder %s92_s18, %s1692_s25  ;;  %p1698_p9 = scmp.lt.s32.totalorder %s1692_s25, %s1692_s25 }
  0x59   :  { %p1699_p10 = por %p1698_p9, %p1697_p8 }
  0x5b   :  { %p1700_p11 = pnand %p1699_p10, %p1693_p7 }
  0x5d   :  { %1703 = shalt.err (!%p1700_p11)
}
  0x5e   :  { %97 = dma.hbm_to_vmem [thread:$0]  %s2093_s10, 1024, %s92_s18, [#allocation9], %s1763_s22, %s1763_s22, %s1764_s0  }
  0x5f   :  { %s1767_s26 = smov [#allocation11]   ;;  %s1704_s20 = scalar_lea.hbm %s2097_s14, 1024 }
  0x60   :  { %s109_s27 = sshll.u32 %s1767_s26, 4  ;;  %p1705_p12 = scmp.ne.s32.totalorder %s2097_s14, %s1704_s20  ;;  %s110_s27 = int_to_ptr.vmem [resolvable:$true] %s109_s27 }
  0x61   :  { %p1708_p13 = scmp.lt.u32.totalorder %s1704_s20, %s2097_s14 }
  0x63   :  { %p1710_p0 = pnand %p1708_p13, %p1705_p12 }
  0x65   :  { %1713 = shalt.err (!%p1710_p0)
}
  0x66   :  { %s1714_s17 = scalar_lea.vmem %s110_s27, 1024  ;;  %p1719_p2 = scmp.lt.s32.totalorder %s110_s27, %s110_s27 }
  0x67   :  { %p1715_p1 = scmp.ne.s32.totalorder %s110_s27, %s1714_s17  ;;  %p1720_p3 = scmp.lt.s32.totalorder %s1714_s17, %s1714_s17 }
  0x69   :  { %p1721_p4 = por %p1720_p3, %p1719_p2 }
  0x6b   :  { %p1722_p5 = pnand %p1721_p4, %p1715_p1 }
  0x6d   :  { %1725 = shalt.err (!%p1722_p5)
}
  0x6e   :  { %115 = dma.hbm_to_vmem [thread:$0]  %s2097_s14, 1024, %s110_s27, [#allocation12], %s1763_s22, %s1763_s22, %s1764_s0  }
  0x6f   :  { %1748 = dma.done.wait [#allocation3], 128  }
  0x70   :  { %1749 = vsyncadd [#allocation3], 4294967168 }
  0x71   :  { %1750 = dma.done.wait [#allocation6], 4096  }
  0x72   :  { %1751 = vsyncadd [#allocation6], 4294963200 }
  0x73   :  { %1752 = dma.done.wait [#allocation9], 2048  }
  0x74   :  { %1753 = vsyncadd [#allocation9], 4294965248 }
  0x75   :  { %1754 = dma.done.wait [#allocation12], 1024  }
  0x76   :  { %1755 = vsyncadd [#allocation12], 4294966272  ;;  %v1768_v0 = vmov 0   ;;  %v1769_v1 = vmov 0.0   ;;  %v1508_v2 = vld [vmem:[#allocation5 + $0x4] ss:$12 sps:$4 sm:$0xff]   ;;  %v137_v27 = vlaneseq }
  0x77   :  { %361 = vmatprep.mubr.bf16.mxu0 %v1768_v0  ;;  %1369 = vmatprep.subr.bf16.mxu1 %v1769_v1  ;;  %v1510_v3 = vld [vmem:[#allocation5] ss:$12 sps:$4 sm:$0xff]   ;;  %v1511_v4 = vld [vmem:[#allocation5 + $0x1c] ss:$12 sps:$4 sm:$0xff]   ;;  %v1513_v5 = vld [vmem:[#allocation5 + $0x18] ss:$12 sps:$4 sm:$0xff]  }
  0x78   :  { %329 = vmatprep.subr.bf16.mxu0 %v1508_v2  ;;  %v1514_v6 = vld [vmem:[#allocation5 + $0x34] ss:$12 sps:$4 sm:$0xff]   ;;  %v1516_v7 = vld [vmem:[#allocation5 + $0x30] ss:$12 sps:$4 sm:$0xff]   ;;  %v1517_v8 = vld [vmem:[#allocation5 + $0x4c] ss:$12 sps:$4 sm:$0xff]  }
  0x79   :  { %330 = vmatpush1.bf16.msra.mxu0 %v1510_v3  ;;  %v1519_v9 = vld [vmem:[#allocation5 + $0x48] ss:$12 sps:$4 sm:$0xff]   ;;  %v1520_v11 = vld [vmem:[#allocation5 + $0x64] ss:$12 sps:$4 sm:$0xff]   ;;  %v1534_v12 = vld [vmem:[#allocation5 + $0x20] ss:$12 sps:$4 sm:$0xff]  }
  0x7a   :  { %331 = vmatprep.subr.bf16.mxu0 %v1511_v4  ;;  %v1533_v10 = vld [vmem:[#allocation5 + $0x8] ss:$12 sps:$4 sm:$0xff]   ;;  %v1522_v13 = vld [vmem:[#allocation5 + $0x60] ss:$12 sps:$4 sm:$0xff]   ;;  %v1525_v15 = vld [vmem:[#allocation5 + $0x78] ss:$12 sps:$4 sm:$0xff]  }
  0x7b   :  { %1370 = vmatpush3.bf16.msra.mxu1 %v1533_v10  ;;  %v1523_v14 = vld [vmem:[#allocation5 + $0x7c] ss:$12 sps:$4 sm:$0xff]   ;;  %v1535_v16 = vld [vmem:[#allocation5 + $0x38] ss:$12 sps:$4 sm:$0xff]   ;;  %v1526_v17 = vld [vmem:[#allocation5 + $0x94] ss:$12 sps:$4 sm:$0xff]  }
  0x7c   :  { %1371 = vmatprep.subr.bf16.mxu1 %v1769_v1  ;;  %v1536_v18 = vld [vmem:[#allocation5 + $0x50] ss:$12 sps:$4 sm:$0xff]   ;;  %v1529_v20 = vld [vmem:[#allocation5 + $0xac] ss:$12 sps:$4 sm:$0xff]   ;;  %v1537_v21 = vld [vmem:[#allocation5 + $0x68] ss:$12 sps:$4 sm:$0xff]  }
  0x7d   :  { %332 = vmatpush1.bf16.msra.mxu0 %v1513_v5  ;;  %v1528_v19 = vld [vmem:[#allocation5 + $0x90] ss:$12 sps:$4 sm:$0xff]   ;;  %v1531_v22 = vld [vmem:[#allocation5 + $0xa8] ss:$12 sps:$4 sm:$0xff]   ;;  %v1538_v24 = vld [vmem:[#allocation5 + $0x80] ss:$12 sps:$4 sm:$0xff]  }
  0x7e   :  { %333 = vmatprep.subr.bf16.mxu0 %v1514_v6  ;;  %v1949_v23 = vld [vmem:[#allocation2] sm:$0xff]   ;;  %vm1770_vm0 = vmmov 0   ;;  %v181_v28 = vshrl.u32 %v137_v27, 7  ;;  %vm572_vm1 = vcmask 1043456   ;;  %v1771_v58 = vmov 1966171168  }
  0x7f   :  { %1372 = vmatpush3.bf16.msra.mxu1 %v1534_v12  ;;  %v1539_v25 = vld [vmem:[#allocation5 + $0x98] ss:$12 sps:$4 sm:$0xff]   ;;  %v1540_v26 = vld [vmem:[#allocation5 + $0xb0] ss:$12 sps:$4 sm:$0xff]   ;;  %1385 = vmatprep.mubr.msk.bf16.mxu1 %vm1770_vm0, %v1769_v1  ;;  %v505_v59 = vunpack.c.l.s4 %v1771_v58  ;;  %vm544_vm2 = vcmask 64512   ;;  %vm1137_vm4 = vcmask 1041409  }
  0x80   :  { %1373 = vmatprep.subr.bf16.mxu1 %v1769_v1  ;;  %v186_v29 = vsub.s32 1, %v181_v28  ;;  %v178_v30 = vld [vmem:[%s2086_s3] sm:$0x7]  ;;  %v1969_v32 = vsub.s32 0, %v181_v28  ;;  %v190_v46 = vsub.s32 2, %v181_v28  ;;  %s1772_s24 = smov [#allocation13]  }
  0x81   :  { %334 = vmatpush1.bf16.msra.mxu0 %v1516_v7  ;;  %v506_v60 = vunpack.c.0.s8 %v505_v59  ;;  %v501_v61 = vld [vmem:[%s2084_s1] sm:$0x3] }
  0x82   :  { %335 = vmatprep.subr.bf16.mxu0 %v1517_v8  ;;  %v187_v31 = vrot.slane %v178_v30, %v186_v29  ;;  %v183_v37 = vrot.slane %v178_v30, %v1969_v32  ;;  %v191_v47 = vrot.slane %v178_v30, %v190_v46  ;;  %v502_v62 = vsub.f32 1.0, %v501_v61  ;;  %v1544_v46 = vld [vmem:[#allocation7 + $0x18] sm:$0xff]  }
  0x83   :  { %1374 = vmatpush3.bf16.msra.mxu1 %v1535_v16  ;;  %v509_v63 = vsub.s32 %v506_v60, %v181_v28  ;;  %v1276_v60 = vld [vmem:[%s2088_s5] ss:$0 sm:$0xff]  ;;  %v144_v61 = vunpack.c.l.bf16 %v1949_v23 }
  0x84   :  { %1375 = vmatprep.subr.bf16.mxu1 %v1769_v1 }
  0x85   :  { %336 = vmatpush1.bf16.msra.mxu0 %v1519_v9  ;;  %v510_v0 = vrot.slane %v502_v62, %v509_v63 }
  0x86   :  { %337 = vmatprep.subr.bf16.mxu0 %v1520_v11 }
  0x87   :  { %1376 = vmatpush3.bf16.msra.mxu1 %v1536_v18  ;;  %v511_v2 = vcombine.high %v510_v0, %v510_v0  ;;  %v518_v3 = vrot.slane %v510_v0, %v509_v63 }
  0x88   :  { %1377 = vmatprep.subr.bf16.mxu1 %v1769_v1 }
  0x89   :  { %338 = vmatpush1.bf16.msra.mxu0 %v1522_v13  ;;  %v525_v4 = vrot.slane %v511_v2, %v509_v63  ;;  %v528_v5 = vmul.f32 -1e+09, %v518_v3  ;;  %v145_v2 = vunpack.c.h.bf16 %v1949_v23 }
  0x8a   :  { %339 = vmatprep.subr.bf16.mxu0 %v1523_v14 }
  0x8b   :  { %1378 = vmatpush3.bf16.msra.mxu1 %v1537_v21  ;;  %v529_v6 = vmul.f32 -1e+09, %v525_v4  ;;  %v535_v7 = vrot.slane %v528_v5, %v1969_v32 }
  0x8c   :  { %1379 = vmatprep.subr.bf16.mxu1 %v1769_v1 }
  0x8d   :  { %340 = vmatpush1.bf16.msra.mxu0 %v1525_v15  ;;  %v539_v11 = vrot.slane %v529_v6, %v1969_v32 }
  0x8e   :  { %341 = vmatprep.subr.bf16.mxu0 %v1526_v17 }
  0x8f   :  { %1380 = vmatpush3.bf16.msra.mxu1 %v1538_v24 }
  0x90   :  { %1381 = vmatprep.subr.bf16.mxu1 %v1769_v1 }
  0x91   :  { %342 = vmatpush1.bf16.msra.mxu0 %v1528_v19 }
  0x92   :  { %343 = vmatprep.subr.bf16.mxu0 %v1529_v20 }
  0x93   :  { %1382 = vmatpush3.bf16.msra.mxu1 %v1539_v25 }
  0x94   :  { %1383 = vmatprep.subr.bf16.mxu1 %v1769_v1 }
  0x95   :  { %344 = vmatpush1.bf16.msra.mxu0 %v1531_v22 }
  0x96   :  { %1389 = vmatprep.subr.bf16.mxu0 %v1769_v1 }
  0x97   :  { %1384 = vmatpush3.bf16.msra.mxu1 %v1540_v26 }
  0x98   :  { %362 = vmatmul.mubr.bf16.vlgmr.msra.gmra.mrb[0].mxu0 %v1949_v23  ;;  %1395 = vmatprep.subr.bf16.mxu1 %v1769_v1 }
  0x99   :  { %1391 = vmatprep.mubr.msk.bf16.mxu0 %vm1770_vm0, %v1769_v1 }
  0x9a   :  { %1386 = vmatmul.mubr.bf16.vlgmr.msra.gmra.mrb[0].mxu1 %v1949_v23 }
  0x9b   :  { %1397 = vmatprep.mubr.msk.bf16.mxu1 %vm1770_vm0, %v1769_v1 }
 0x16b   :  { %v363_v33 = vpop.f32.mrb[0].mxu0 }
 0x16c   :  { %v365_v34 = vpop.f32.mrb[1].mxu0  ;;  %v364_v42 = vadd.f32 %v363_v33, %v183_v37 }
 0x16d   :  { %v366_v35 = vadd.f32 %v365_v34, %v187_v31  ;;  %v367_v36 = vpop.f32.mrb[2].mxu0  ;;  %v406_v48 = vpop.f32.mrb[0].mxu1 }
 0x16e   :  { %v369_v38 = vpop.f32.mrb[3].mxu0  ;;  %v368_v43 = vadd.f32 %v367_v36, %v183_v37  ;;  %v413_v44 = vpack.c.bf16 %v364_v42, %v364_v42  ;;  %v407_v49 = vadd.f32 %v406_v48, %v191_v47  ;;  %v1387_v50 = vpop.f32.mrb[1].mxu1  ;;  %v1546_v48 = vld [vmem:[#allocation7 + $0x28] sm:$0xff]  }
 0x16f   :  { %v415_v39 = vpack.c.bf16 %v366_v35, %v366_v35  ;;  %v370_v40 = vadd.f32 %v369_v38, %v187_v31  ;;  %v409_v51 = vpop.f32.mrb[2].mxu1  ;;  %v1548_v50 = vld [vmem:[#allocation7 + $0x38] sm:$0xff]  }
 0x170   :  { %v414_v45 = vpack.c.bf16 %v368_v43, %v368_v43  ;;  %v417_v52 = vpack.c.bf16 %v407_v49, %v407_v49  ;;  %v410_v53 = vadd.f32 %v409_v51, %v191_v47  ;;  %v1388_v54 = vpop.f32.mrb[3].mxu1  ;;  %v1542_v43 = vld [vmem:[#allocation7 + $0x8] sm:$0xff]   ;;  %v1545_v47 = vld [vmem:[#allocation7 + $0x20] sm:$0xff]   ;;  %v1547_v49 = vld [vmem:[#allocation7 + $0x30] sm:$0xff]  }
 0x171   :  { %v416_v41 = vpack.c.bf16 %v370_v40, %v370_v40  ;;  %1390 = vmatpush3.bf16.xpose.msra.mxu0 %v415_v39  ;;  %v1541_v39 = vld [vmem:[#allocation7] sm:$0xff]  }
 0x172   :  { %1401 = vmatprep.subr.bf16.mxu0 %v1769_v1  ;;  %v574_v55 = vsel %vm572_vm1, %v417_v52, 0  ;;  %v418_v56 = vpack.c.bf16 %v410_v53, %v410_v53 }
 0x173   :  { %1396 = vmatpush3.bf16.xpose.msra.mxu1 %v416_v41 }
 0x174   :  { %1407 = vmatprep.subr.bf16.mxu1 %v1769_v1  ;;  %v620_v57 = vsel %vm572_vm1, %v418_v56, 0 }
 0x178   :  { %1392 = vmatmul.mubr.bf16.vlgmr.msra.gmra.mrb[4].mxu0 %v413_v44 }
 0x179   :  { %1403 = vmatprep.mubr.msk.bf16.mxu0 %vm1770_vm0, %v1769_v1  ;;  %1402 = vmatpush3.bf16.msra.mxu0 %v574_v55 }
 0x17a   :  { %1398 = vmatmul.mubr.bf16.vlgmr.msra.gmra.mrb[4].mxu1 %v414_v45  ;;  %1413 = vmatprep.subr.bf16.mxu0 %v1769_v1  ;;  %v1543_v45 = vld [vmem:[#allocation7 + $0x10] sm:$0xff]  }
 0x17b   :  { %1409 = vmatprep.mubr.msk.bf16.mxu1 %vm1770_vm0, %v1769_v1  ;;  %1408 = vmatpush3.bf16.msra.mxu1 %v620_v57 }
 0x17c   :  { %1433 = vmatprep.subr.bf16.mxu1 %v1769_v1 }
 0x24b   :  { %v453_v8 = vpop.f32.mrb[4].mxu0 }
 0x24c   :  { %v499_v9 = vmul.f32 0.17677669, %v453_v8  ;;  %v1393_v10 = vpop.f32.mrb[5].mxu0  ;;  %v1549_v8 = vld [vmem:[#allocation8] sm:$0xff]  }
 0x24d   :  { %v456_v12 = vpop.f32.mrb[6].mxu0  ;;  %v493_v13 = vpop.f32.mrb[4].mxu1  ;;  %v138_v10 = vand.u32 127, %v137_v27  ;;  %v1552_v27 = vld [vmem:[#allocation8 + $0x18] sm:$0xff]  }
 0x24e   :  { %v500_v14 = vmul.f32 0.17677669, %v493_v13  ;;  %v1394_v15 = vpop.f32.mrb[7].mxu0  ;;  %v1399_v16 = vpop.f32.mrb[5].mxu1  ;;  %v542_v17 = vadd.f32 %v535_v7, %v499_v9  ;;  %v1550_v9 = vld [vmem:[#allocation8 + $0x8] sm:$0xff]  }
 0x24f   :  { %v496_v18 = vpop.f32.mrb[6].mxu1  ;;  %vm139_vm3 = vcmp.lt.s32.totalorder %v138_v10, 32 }
 0x250   :  { %v1400_v19 = vpop.f32.mrb[7].mxu1  ;;  %v545_v20 = vsel %vm544_vm2, %v542_v17, -inf  ;;  %v543_v21 = vadd.f32 %v539_v11, %v500_v14  ;;  %v2014_v13 = vsel %vm139_vm3, 1.0, %v1769_v1 }
 0x251   :  { %546 = vmax.xlane.f32.xlu0 %v545_v20 }
 0x252   :  { %v548_v22 = vsel %vm544_vm2, %v543_v21, -inf }
 0x255   :  { %549 = vmax.xlane.f32.xlu0 %v548_v22  ;;  %v1553_v22 = vld [vmem:[#allocation8 + $0x20] sm:$0xff]  }
 0x2de   :  { %v547_v24 = vpop.xlane.xlu0 %546 }
 0x2df   :  { %v551_v25 = vsub.f32 %v542_v17, %v547_v24  ;;  %v1554_v24 = vld [vmem:[#allocation8 + $0x28] sm:$0xff]  }
 0x2e1   :  { %v553_v26 = vmul.f32 1.442695, %v551_v25  ;;  %v1555_v25 = vld [vmem:[#allocation8 + $0x30] sm:$0xff]  }
 0x2e2   :  { %v550_v28 = vpop.xlane.xlu0 %549 }
 0x2e3   :  { %1574 = vpow2.f32 %v553_v26  ;;  %v552_v29 = vsub.f32 %v543_v21, %v550_v28  ;;  %v1551_v21 = vld [vmem:[#allocation8 + $0x10] sm:$0xff]   ;;  %v1556_v26 = vld [vmem:[#allocation8 + $0x38] sm:$0xff]  }
 0x2e5   :  { %v555_v30 = vmul.f32 1.442695, %v552_v29 }
 0x2e7   :  { %1576 = vpow2.f32 %v555_v30 }
 0x2ed   :  { %v1575_v31 = vpop.eup %1574 }
 0x2ee   :  { %v557_v32 = vsel %vm544_vm2, %v1575_v31, 0.0 }
 0x2ef   :  { %558 = vadd.xlane.f32.xlu1 %v557_v32 }
 0x2f1   :  { %v1577_v33 = vpop.eup %1576 }
 0x2f2   :  { %v560_v34 = vsel %vm544_vm2, %v1577_v33, 0.0 }
 0x2f3   :  { %561 = vadd.xlane.f32.xlu1 %v560_v34 }
 0x37c   :  { %v559_v35 = vpop.xlane.xlu1 %558 }
 0x37d   :  { %1578 = vrcp.f32 %v559_v35  ;;  %v1285_v35 = vld [vmem:[%s2089_s6] ss:$0 sm:$0xff] }
 0x380   :  { %v562_v36 = vpop.xlane.xlu1 %561 }
 0x381   :  { %1580 = vrcp.f32 %v562_v36 }
 0x387   :  { %v1579_v37 = vpop.eup %1578 }
 0x388   :  { %v565_v38 = vmul.f32 %v1579_v37, %v1575_v31 }
 0x38a   :  { %v567_v40 = vpack.c.bf16 %v565_v38, %v565_v38 }
 0x38b   :  { %v1581_v41 = vpop.eup %1580 }
 0x38c   :  { %v566_v42 = vmul.f32 %v1581_v41, %v1577_v33  ;;  %1404 = vmatmul.mubr.msk.bf16.vlgmr.msra.gmra.mrb[8].mxu0 %vm544_vm2, %v567_v40  ;;  %v1286_v40 = vld [vmem:[%s2090_s7] ss:$0 sm:$0xff] }
 0x38d   :  { %1414 = vmatpush3.bf16.msra.mxu0 %v1541_v39  ;;  %1429 = vmatprep.mubr.msk.bf16.mxu0 %vm1770_vm0, %v1769_v1 }
 0x38e   :  { %v568_v44 = vpack.c.bf16 %v566_v42, %v566_v42  ;;  %1415 = vmatprep.subr.bf16.mxu0 %v1769_v1 }
 0x390   :  { %1410 = vmatmul.mubr.msk.bf16.vlgmr.msra.gmra.mrb[8].mxu1 %vm544_vm2, %v568_v44 }
 0x391   :  { %1416 = vmatpush3.bf16.msra.mxu0 %v1542_v43  ;;  %1449 = vmatprep.mubr.msk.bf16.mxu1 %vm1770_vm0, %v1769_v1 }
 0x392   :  { %1417 = vmatprep.subr.bf16.mxu0 %v1769_v1  ;;  %1434 = vmatpush3.bf16.msra.mxu1 %v1549_v8 }
 0x393   :  { %1435 = vmatprep.subr.bf16.mxu1 %v1769_v1 }
 0x395   :  { %1418 = vmatpush3.bf16.msra.mxu0 %v1543_v45  ;;  %v1557_v45 = vld [vmem:[#allocation10] sm:$0xff]  }
 0x396   :  { %1419 = vmatprep.subr.bf16.mxu0 %v1769_v1  ;;  %1436 = vmatpush3.bf16.msra.mxu1 %v1550_v9 }
 0x397   :  { %1437 = vmatprep.subr.bf16.mxu1 %v1769_v1 }
 0x399   :  { %1420 = vmatpush3.bf16.msra.mxu0 %v1544_v46  ;;  %v1558_v46 = vld [vmem:[#allocation10 + $0x8] sm:$0xff]  }
 0x39a   :  { %1421 = vmatprep.subr.bf16.mxu0 %v1769_v1  ;;  %1438 = vmatpush3.bf16.msra.mxu1 %v1551_v21 }
 0x39b   :  { %1439 = vmatprep.subr.bf16.mxu1 %v1769_v1 }
 0x39d   :  { %1422 = vmatpush3.bf16.msra.mxu0 %v1545_v47  ;;  %v1559_v47 = vld [vmem:[#allocation10 + $0x10] sm:$0xff]  }
 0x39e   :  { %1423 = vmatprep.subr.bf16.mxu0 %v1769_v1  ;;  %1440 = vmatpush3.bf16.msra.mxu1 %v1552_v27 }
 0x39f   :  { %1441 = vmatprep.subr.bf16.mxu1 %v1769_v1 }
 0x3a1   :  { %1424 = vmatpush3.bf16.msra.mxu0 %v1546_v48  ;;  %v1560_v48 = vld [vmem:[#allocation10 + $0x18] sm:$0xff]  }
 0x3a2   :  { %1425 = vmatprep.subr.bf16.mxu0 %v1769_v1  ;;  %1442 = vmatpush3.bf16.msra.mxu1 %v1553_v22 }
 0x3a3   :  { %1443 = vmatprep.subr.bf16.mxu1 %v1769_v1 }
 0x3a5   :  { %1426 = vmatpush3.bf16.msra.mxu0 %v1547_v49  ;;  %v1561_v49 = vld [vmem:[#allocation10 + $0x20] sm:$0xff]  }
 0x3a6   :  { %1427 = vmatprep.subr.bf16.mxu0 %v1769_v1  ;;  %1444 = vmatpush3.bf16.msra.mxu1 %v1554_v24 }
 0x3a7   :  { %1445 = vmatprep.subr.bf16.mxu1 %v1769_v1 }
 0x3a9   :  { %1428 = vmatpush3.bf16.msra.mxu0 %v1548_v50  ;;  %v1562_v50 = vld [vmem:[#allocation10 + $0x28] sm:$0xff]  }
 0x3aa   :  { %1453 = vmatprep.subr.bf16.mxu0 %v1769_v1  ;;  %1446 = vmatpush3.bf16.msra.mxu1 %v1555_v25 }
 0x3ab   :  { %1447 = vmatprep.subr.bf16.mxu1 %v1769_v1 }
 0x3ae   :  { %1448 = vmatpush3.bf16.msra.mxu1 %v1556_v26 }
 0x3af   :  { %1473 = vmatprep.subr.bf16.mxu1 %v1769_v1 }
 0x45f   :  { %v610_v51 = vpop.f32.mrb[8].mxu0 }
 0x460   :  { %v1405_v52 = vpop.f32.mrb[9].mxu0 }
 0x461   :  { %v613_v53 = vpop.f32.mrb[10].mxu0  ;;  %v1564_v52 = vld [vmem:[#allocation10 + $0x38] sm:$0xff]  }
 0x462   :  { %v1406_v54 = vpop.f32.mrb[11].mxu0  ;;  %v1287_v53 = vld [vmem:[%s2092_s9] ss:$0 sm:$0xff] }
 0x463   :  { %v656_v55 = vpop.f32.mrb[8].mxu1 }
 0x464   :  { %v662_v56 = vpack.c.bf16 %v656_v55, %v610_v51  ;;  %v1411_v57 = vpop.f32.mrb[9].mxu1  ;;  %v1563_v51 = vld [vmem:[#allocation10 + $0x30] sm:$0xff]  }
 0x465   :  { %v659_v58 = vpop.f32.mrb[10].mxu1 }
 0x466   :  { %v1412_v59 = vpop.f32.mrb[11].mxu1  ;;  %1430 = vmatmul.mubr.bf16.vlgmr.msra.gmra.mrb[12].mxu0 %v662_v56 }
 0x467   :  { %1469 = vmatprep.mubr.msk.bf16.mxu0 %vm1770_vm0, %v1769_v1  ;;  %1454 = vmatpush3.bf16.msra.mxu0 %v1557_v45 }
 0x468   :  { %1455 = vmatprep.subr.bf16.mxu0 %v1769_v1 }
 0x46b   :  { %1456 = vmatpush3.bf16.msra.mxu0 %v1558_v46 }
 0x46c   :  { %1457 = vmatprep.subr.bf16.mxu0 %v1769_v1 }
 0x46f   :  { %1458 = vmatpush3.bf16.msra.mxu0 %v1559_v47 }
 0x470   :  { %1459 = vmatprep.subr.bf16.mxu0 %v1769_v1 }
 0x473   :  { %1460 = vmatpush3.bf16.msra.mxu0 %v1560_v48 }
 0x474   :  { %1461 = vmatprep.subr.bf16.mxu0 %v1769_v1 }
 0x477   :  { %1462 = vmatpush3.bf16.msra.mxu0 %v1561_v49 }
 0x478   :  { %1463 = vmatprep.subr.bf16.mxu0 %v1769_v1 }
 0x47b   :  { %1464 = vmatpush3.bf16.msra.mxu0 %v1562_v50  ;;  %v1305_v50 = vld [vmem:[%s2095_s12] ss:$0 sm:$0xff] }
 0x47c   :  { %1465 = vmatprep.subr.bf16.mxu0 %v1769_v1 }
 0x47f   :  { %1466 = vmatpush3.bf16.msra.mxu0 %v1563_v51 }
 0x480   :  { %1467 = vmatprep.subr.bf16.mxu0 %v1769_v1 }
 0x483   :  { %1468 = vmatpush3.bf16.msra.mxu0 %v1564_v52 }
 0x539   :  { %v768_v62 = vpop.f32.mrb[12].mxu0 }
 0x53a   :  { %v769_v63 = vadd.f32 %v1276_v60, %v768_v62  ;;  %v1431_v0 = vpop.f32.mrb[13].mxu0 }
 0x53b   :  { %v771_v3 = vpop.f32.mrb[14].mxu0 }
 0x53c   :  { %v772_v4 = vadd.f32 %v1276_v60, %v771_v3  ;;  %v1432_v5 = vpop.f32.mrb[15].mxu0  ;;  %v775_v6 = vadd.f32 %v769_v63, %v144_v61 }
 0x53e   :  { %779 = vadd.xlane.f32.xlu0 %v775_v6  ;;  %v776_v7 = vadd.f32 %v772_v4, %v145_v2 }
 0x540   :  { %781 = vadd.xlane.f32.xlu1 %v776_v7 }
 0x5cb   :  { %v780_v11 = vpop.xlane.xlu0 %779 }
 0x5cc   :  { %v783_v23 = vmul.f32 0.03125, %v780_v11 }
 0x5cd   :  { %v782_v12 = vpop.xlane.xlu1 %781 }
 0x5ce   :  { %v785_v14 = vsub.f32 %v775_v6, %v783_v23  ;;  %v784_v15 = vmul.f32 0.03125, %v782_v12 }
 0x5d0   :  { %v786_v16 = vsub.f32 %v776_v7, %v784_v15  ;;  %v787_v17 = vmul.f32 %v2014_v13, %v785_v14 }
 0x5d2   :  { %v789_v18 = vmul.f32 %v787_v17, %v787_v17  ;;  %v788_v19 = vmul.f32 %v2014_v13, %v786_v16  ;;  %v1296_v16 = vld [vmem:[%s2094_s11] ss:$0 sm:$0xff] }
 0x5d4   :  { %791 = vadd.xlane.f32.xlu0 %v789_v18  ;;  %v790_v20 = vmul.f32 %v788_v19, %v788_v19 }
 0x5d6   :  { %793 = vadd.xlane.f32.xlu1 %v790_v20 }
 0x661   :  { %v792_v28 = vpop.xlane.xlu0 %791 }
 0x662   :  { %v795_v29 = vmul.f32 0.03125, %v792_v28 }
 0x663   :  { %v794_v30 = vpop.xlane.xlu1 %793 }
 0x664   :  { %v797_v31 = vadd.f32 1e-05, %v795_v29  ;;  %v796_v32 = vmul.f32 0.03125, %v794_v30 }
 0x666   :  { %1582 = vrsqrt.f32 %v797_v31  ;;  %v798_v33 = vadd.f32 1e-05, %v796_v32 }
 0x668   :  { %1584 = vrsqrt.f32 %v798_v33 }
 0x670   :  { %v1583_v34 = vpop.eup %1582 }
 0x671   :  { %v801_v36 = vmul.f32 %v1583_v34, %v787_v17 }
 0x672   :  { %v1585_v37 = vpop.eup %1584 }
 0x673   :  { %v802_v38 = vmul.f32 %v1585_v37, %v788_v19  ;;  %v809_v39 = vmul.f32 %v1285_v35, %v801_v36  ;;  %v1565_v36 = vld [vmem:[#allocation11] sm:$0xff]   ;;  %v1566_v37 = vld [vmem:[#allocation11 + $0x8] sm:$0xff]  }
 0x675   :  { %v810_v41 = vmul.f32 %v1285_v35, %v802_v38  ;;  %v2030_v42 = vadd.f32 %v1286_v40, %v809_v39  ;;  %v1567_v38 = vld [vmem:[#allocation11 + $0x10] sm:$0xff]   ;;  %v1568_v39 = vld [vmem:[#allocation11 + $0x18] sm:$0xff]  }
 0x677   :  { %v2032_v43 = vadd.f32 %v1286_v40, %v810_v41  ;;  %v1570_v40 = vld [vmem:[#allocation11 + $0x28] sm:$0xff]   ;;  %v1571_v41 = vld [vmem:[#allocation11 + $0x30] sm:$0xff]  }
 0x679   :  { %v819_v44 = vpack.c.bf16 %v2032_v43, %v2030_v42 }
 0x67b   :  { %1450 = vmatmul.mubr.bf16.vlgmr.msra.gmra.mrb[12].mxu1 %v819_v44 }
 0x67c   :  { %1489 = vmatprep.mubr.msk.bf16.mxu1 %vm1770_vm0, %v1769_v1  ;;  %1474 = vmatpush3.bf16.msra.mxu1 %v1565_v36 }
 0x67d   :  { %1475 = vmatprep.subr.bf16.mxu1 %v1769_v1 }
 0x680   :  { %1476 = vmatpush3.bf16.msra.mxu1 %v1566_v37 }
 0x681   :  { %1477 = vmatprep.subr.bf16.mxu1 %v1769_v1 }
 0x684   :  { %1478 = vmatpush3.bf16.msra.mxu1 %v1567_v38 }
 0x685   :  { %1479 = vmatprep.subr.bf16.mxu1 %v1769_v1 }
 0x688   :  { %1480 = vmatpush3.bf16.msra.mxu1 %v1568_v39 }
 0x689   :  { %1481 = vmatprep.subr.bf16.mxu1 %v1769_v1 }
 0x74e   :  { %v925_v54 = vpop.f32.mrb[12].mxu1 }
 0x74f   :  { %v926_v55 = vadd.f32 %v1287_v53, %v925_v54  ;;  %v1451_v56 = vpop.f32.mrb[13].mxu1 }
 0x750   :  { %v928_v57 = vpop.f32.mrb[14].mxu1 }
 0x751   :  { %v934_v58 = vmul.f32 0.044715, %v926_v55  ;;  %v929_v59 = vadd.f32 %v1287_v53, %v928_v57  ;;  %v1452_v60 = vpop.f32.mrb[15].mxu1  ;;  %v932_v10 = vmul.f32 0.5, %v926_v55 }
 0x753   :  { %v936_v61 = vmul.f32 %v934_v58, %v926_v55  ;;  %v935_v62 = vmul.f32 0.044715, %v929_v59  ;;  %v933_v11 = vmul.f32 0.5, %v929_v59 }
 0x755   :  { %v938_v63 = vmul.f32 %v936_v61, %v926_v55  ;;  %v937_v0 = vmul.f32 %v935_v62, %v929_v59 }
 0x757   :  { %v940_v2 = vadd.f32 %v938_v63, %v926_v55  ;;  %v939_v3 = vmul.f32 %v937_v0, %v929_v59 }
 0x759   :  { %v942_v4 = vmul.f32 0.7978846, %v940_v2  ;;  %v941_v5 = vadd.f32 %v939_v3, %v929_v59  ;;  %v1307_v2 = vld [vmem:[%s2098_s15] ss:$0 sm:$0xff] }
 0x75b   :  { %1586 = vtanh.f32 %v942_v4  ;;  %v943_v6 = vmul.f32 0.7978846, %v941_v5 }
 0x75d   :  { %1588 = vtanh.f32 %v943_v6 }
 0x765   :  { %v1587_v7 = vpop.eup %1586 }
 0x766   :  { %v946_v8 = vadd.f32 1.0, %v1587_v7 }
 0x767   :  { %v1589_v9 = vpop.eup %1588 }
 0x768   :  { %v947_v23 = vadd.f32 1.0, %v1589_v9  ;;  %v948_v12 = vmul.f32 %v946_v8, %v932_v10 }
 0x76a   :  { %v949_v14 = vmul.f32 %v947_v23, %v933_v11 }
 0x76c   :  { %v950_v15 = vpack.c.bf16 %v949_v14, %v948_v12 }
 0x76e   :  { %1470 = vmatmul.mubr.bf16.vlgmr.msra.gmra.mrb[16].mxu0 %v950_v15 }
 0x841   :  { %v1056_v17 = vpop.f32.mrb[16].mxu0 }
 0x842   :  { %v1057_v18 = vadd.f32 %v1296_v16, %v1056_v17  ;;  %v1471_v19 = vpop.f32.mrb[17].mxu0 }
 0x843   :  { %v1059_v20 = vpop.f32.mrb[18].mxu0 }
 0x844   :  { %v1060_v21 = vadd.f32 %v1296_v16, %v1059_v20  ;;  %v1472_v27 = vpop.f32.mrb[19].mxu0  ;;  %v1063_v22 = vadd.f32 %v1057_v18, %v2030_v42  ;;  %v1572_v42 = vld [vmem:[#allocation11 + $0x38] sm:$0xff]  }
 0x846   :  { %1067 = vadd.xlane.f32.xlu1 %v1063_v22  ;;  %v1064_v24 = vadd.f32 %v1060_v21, %v2032_v43 }
 0x848   :  { %1069 = vadd.xlane.f32.xlu0 %v1064_v24 }
 0x8d3   :  { %v1068_v25 = vpop.xlane.xlu1 %1067 }
 0x8d4   :  { %v1071_v26 = vmul.f32 0.03125, %v1068_v25 }
 0x8d5   :  { %v1070_v28 = vpop.xlane.xlu0 %1069 }
 0x8d6   :  { %v1073_v29 = vsub.f32 %v1063_v22, %v1071_v26  ;;  %v1072_v30 = vmul.f32 0.03125, %v1070_v28 }
 0x8d8   :  { %v1074_v31 = vsub.f32 %v1064_v24, %v1072_v30  ;;  %v1075_v32 = vmul.f32 %v2014_v13, %v1073_v29 }
 0x8da   :  { %v1077_v33 = vmul.f32 %v1075_v32, %v1075_v32  ;;  %v1076_v34 = vmul.f32 %v2014_v13, %v1074_v31  ;;  %v1569_v13 = vld [vmem:[#allocation11 + $0x20] sm:$0xff]  }
 0x8db   :  { %1482 = vmatpush3.bf16.msra.mxu1 %v1569_v13 }
 0x8dc   :  { %1079 = vadd.xlane.f32.xlu1 %v1077_v33  ;;  %v1078_v35 = vmul.f32 %v1076_v34, %v1076_v34  ;;  %1483 = vmatprep.subr.bf16.mxu1 %v1769_v1 }
 0x8de   :  { %1081 = vadd.xlane.f32.xlu0 %v1078_v35 }
 0x8df   :  { %1484 = vmatpush3.bf16.msra.mxu1 %v1570_v40 }
 0x8e0   :  { %1485 = vmatprep.subr.bf16.mxu1 %v1769_v1 }
 0x8e3   :  { %1486 = vmatpush3.bf16.msra.mxu1 %v1571_v41 }
 0x8e4   :  { %1487 = vmatprep.subr.bf16.mxu1 %v1769_v1  ;;  %v1306_v1 = vld [vmem:[%s2096_s13] ss:$0 sm:$0xff]  ;;  %s1236_s13 = sshll.u32 %s1772_s24, 4  ;;  %s1237_s13 = int_to_ptr.vmem [resolvable:$true] %s1236_s13 }
 0x8e5   :  { %s1726_s20 = scalar_lea.vmem %s1237_s13, 32  ;;  %p1731_p7 = scmp.lt.s32.totalorder %s1237_s13, %s1237_s13 }
 0x8e6   :  { %p1727_p6 = scmp.ne.s32.totalorder %s1237_s13, %s1726_s20  ;;  %p1732_p8 = scmp.lt.s32.totalorder %s1726_s20, %s1726_s20 }
 0x8e7   :  { %1488 = vmatpush3.bf16.msra.mxu1 %v1572_v42 }
 0x8e8   :  { %p1733_p9 = por %p1732_p8, %p1731_p7 }
 0x8ea   :  { %p1734_p10 = pnand %p1733_p9, %p1727_p6 }
 0x969   :  { %v1080_v43 = vpop.xlane.xlu1 %1079 }
 0x96a   :  { %v1083_v44 = vmul.f32 0.03125, %v1080_v43 }
 0x96b   :  { %v1082_v45 = vpop.xlane.xlu0 %1081 }
 0x96c   :  { %v1085_v46 = vadd.f32 1e-05, %v1083_v44  ;;  %v1084_v47 = vmul.f32 0.03125, %v1082_v45 }
 0x96e   :  { %1590 = vrsqrt.f32 %v1085_v46  ;;  %v1086_v48 = vadd.f32 1e-05, %v1084_v47 }
 0x970   :  { %1592 = vrsqrt.f32 %v1086_v48 }
 0x978   :  { %v1591_v49 = vpop.eup %1590 }
 0x979   :  { %v1089_v51 = vmul.f32 %v1591_v49, %v1075_v32 }
 0x97a   :  { %v1593_v52 = vpop.eup %1592 }
 0x97b   :  { %v1097_v53 = vmul.f32 %v1305_v50, %v1089_v51  ;;  %v1090_v54 = vmul.f32 %v1593_v52, %v1076_v34 }
 0x97d   :  { %v1098_v55 = vmul.f32 %v1305_v50, %v1090_v54  ;;  %v1105_v56 = vadd.f32 %v1306_v1, %v1097_v53 }
 0x97f   :  { %v1106_v57 = vadd.f32 %v1306_v1, %v1098_v55  ;;  %v1107_v58 = vpack.c.bf16 %v1105_v56, %v1105_v56 }
 0x981   :  { %v1108_v59 = vpack.c.bf16 %v1106_v57, %v1106_v57  ;;  %v1134_v61 = vunpack.c.l.b16 %v1107_v58 }
 0x983   :  { %v1135_v60 = vunpack.c.l.b16 %v1108_v59 }
 0x985   :  { %v1136_v62 = vrot.slane %v1135_v60, 7 }
 0x987   :  { %v1138_v63 = vsel %vm1137_vm4, %v1136_v62, %v1134_v61 }
 0x988   :  { %v1139_v0 = vpack.c.b16 %v1138_v63, %v1138_v63 }
 0x98a   :  { %1490 = vmatmul.mubr.bf16.vlgmr.msra.gmra.mrb[16].mxu1 %v1139_v0 }
 0xa5d   :  { %v1223_v3 = vpop.f32.mrb[16].mxu1 }
 0xa5e   :  { %v1224_v4 = vadd.f32 %v1307_v2, %v1223_v3  ;;  %v1491_v5 = vpop.f32.mrb[17].mxu1 }
 0xa5f   :  { %v1226_v6 = vpop.f32.mrb[18].mxu1 }
 0xa60   :  { %1229 = vst [vmem:[#allocation13] sm:$0x3] %v1224_v4  ;;  %v1492_v7 = vpop.f32.mrb[19].mxu1 }
 0xa61   :  { %1737 = shalt.err (!%p1734_p10)
}
 0xa62   :  { %s2105_s21 = sld [smem:[#allocation20_spill]] }
 0xa68   :  { %s1738_s15 = scalar_lea.hbm %s2105_s21, 32 }
 0xa69   :  { %p1739_p11 = scmp.ne.s32.totalorder %s2105_s21, %s1738_s15  ;;  %p1742_p12 = scmp.lt.u32.totalorder %s1738_s15, %s2105_s21 }
 0xa6b   :  { %p1744_p13 = pnand %p1742_p12, %p1739_p11 }
 0xa6d   :  { %1747 = shalt.err (!%p1744_p13)
}
 0xa6e   :  { %1239 = dma.vmem_to_hbm [thread:$0]  %s1237_s13, 32, %s2105_s21, [#allocation4]  }
 0xa6f   :  { %1756 = dma.done.wait [#allocation4], 32  }
 0xa70   :  { %1757 = vsyncadd [#allocation4], 4294967264 }
 0xa71   :  { %1243 = vsyncpa [#allocation3], 1 }
 0xa72   :  { %1244 = vsyncpa [#allocation6], 1 }
 0xa73   :  { %1245 = vsyncpa [#allocation9], 1 }
 0xa74   :  { %1246 = vsyncpa [#allocation12], 1 }
 0xa75   :  { %1247 = vsyncpa [#allocation4], 1 }

</bundles_post_ra>
